<compile_context>
chip_gen: v7x
topology: tpu7x:2x2x1
jax: 0.10.0
libtpu: 0.0.40
codegen_flags: <defaults>
</compile_context>

<pallas_src>
import jax
import jax.numpy as jnp
from jax.experimental import pallas as pl
from jax.experimental.pallas import tpu as pltpu

_LN2 = 0.6931471805599453
_BIG_THRESHOLD = 1048576.0  # 2**20: above this, asinh(|x|) ~= log(|x|) + ln(2)


def _asinh_kernel(x_ref, o_ref):
    # Compute in f32 regardless of storage dtype (bf16/f16 inputs upcast).
    x = x_ref[...].astype(jnp.float32)
    ax = jnp.abs(x)
    ax2 = ax * ax

    # Small/moderate |x|:  asinh(|x|) = log1p(|x| + |x|^2 / (1 + sqrt(1+|x|^2)))
    #   - exact near 0 (log1p keeps relative precision for tiny inputs).
    # Large |x| (>2^20):   asinh(|x|) ~= log(|x|) + ln(2) = log1p(|x|) + ln(2)
    #   - avoids |x|^2 overflow; rel error < 1e-7 at the threshold.
    denom = 1.0 + jnp.sqrt(1.0 + ax2)
    if jnp.dtype(o_ref.dtype).itemsize < 4:
        # Low-precision outputs: approx EUP reciprocal (no Newton refinement).
        corr = ax2 * pl.reciprocal(denom, approx=True)
    else:
        corr = ax2 / denom
    small_arg = ax + corr

    big = ax > _BIG_THRESHOLD
    v = jnp.where(big, ax, small_arg)          # large-branch NaNs selected away
    y = jnp.log1p(v) + jnp.where(big, _LN2, 0.0)   # y >= 0 (or NaN)

    # Odd symmetry via sign-bit transfer: handles -0.0, +/-inf and NaN exactly.
    y_bits = pltpu.bitcast(y, jnp.uint32)
    sign_bits = pltpu.bitcast(x, jnp.uint32) & jnp.uint32(0x80000000)
    signed = pltpu.bitcast(y_bits | sign_bits, jnp.float32)
    o_ref[...] = signed.astype(o_ref.dtype)


def asinh_pallas(x: jax.Array) -> jax.Array:
    """Elementwise asinh matching torch.asinh semantics (shape/dtype preserved)."""
    orig_shape = x.shape
    orig_dtype = x.dtype
    total = x.size
    if total == 0:
        return x

    itemsize = jnp.dtype(orig_dtype).itemsize
    # Packed-tile sublane count: (8,128) for 32-bit, (16,128) for 16-bit,
    # (32,128) for 8-bit dtypes.
    sublanes = 8 * max(1, 4 // itemsize)

    # Widest lane-dense last dim (multiple of 128) that divides the element
    # count -> copy-free reshape in the common case. Pad only if no multiple
    # of 128 divides the total.
    width = None
    for w in (1024, 512, 256, 128):
        if total % w == 0:
            width = w
            break
    if width is None:
        width = 1024 if total >= 1024 else 128

    x_flat = x.reshape(-1)
    pad = (-total) % width
    if pad:
        x_flat = jnp.pad(x_flat, (0, pad))
    rows = (total + pad) // width
    x2d = x_flat.reshape(rows, width)

    # ~4 MiB per block: per-step DMA time dominates the ~0.35 us grid-step
    # overhead on every generation; 2 (double-buffer) x 2 (in+out) x 4 MiB
    # = 16 MiB of pipeline buffers under the explicit 32 MiB limit below.
    target_block_bytes = 4 << 20
    block_rows = max(
        sublanes,
        (target_block_bytes // (width * itemsize)) // sublanes * sublanes,
    )
    if rows <= block_rows:
        # Single block covering the full array (always a legal block shape).
        block_rows = rows
        grid = (1,)
    else:
        # Partial last block is handled by Pallas (masked DMA writeback).
        grid = (pl.cdiv(rows, block_rows),)

    n_elems = rows * width
    cost = pl.CostEstimate(
        flops=10 * n_elems,
        transcendentals=3 * n_elems,
        bytes_accessed=2 * n_elems * itemsize,
    )

    out2d = pl.pallas_call(
        _asinh_kernel,
        out_shape=jax.ShapeDtypeStruct((rows, width), orig_dtype),
        grid_spec=pltpu.PrefetchScalarGridSpec(
            num_scalar_prefetch=0,
            grid=grid,
            in_specs=[pl.BlockSpec((block_rows, width), lambda i: (i, 0))],
            out_specs=pl.BlockSpec((block_rows, width), lambda i: (i, 0)),
        ),
        compiler_params=pltpu.CompilerParams(
            # Independent row-blocks; shards across TensorCores where megacore
            # sharding applies (neutral on single-TC chips).
            dimension_semantics=("parallel",),
            # Explicit limit: required on v5e once blocks exceed ~1 MiB; safe
            # on v6e (128 MiB physical) and v7x (64 MiB physical).
            vmem_limit_bytes=32 * 1024 * 1024,
        ),
        cost_estimate=cost,
    )(x2d)

    out_flat = out2d.reshape(-1)
    if pad:
        out_flat = out_flat[:total]
    return out_flat.reshape(orig_shape)


if __name__ == "__main__":
    key = jax.random.PRNGKey(0)
    # NCHW-style small input, consistent with a typical conv-model test shape.
    x = jax.random.normal(key, (2, 4, 16, 16), dtype=jnp.float32) * 3.0

    y = asinh_pallas(x)
    jax.block_until_ready(y)

    y_ref = jnp.arcsinh(x)
    assert y.shape == x.shape and y.dtype == x.dtype
    assert jnp.max(jnp.abs(y - y_ref)) < 1e-5

    # Edge cases: tiny values (precision), huge values (|x|^2 would overflow),
    # signed zeros (exact -0.0 via sign-bit transfer). Also exercises the
    # padded (non-128-aligned) wrapper path.
    x_edge = jnp.array(
        [0.0, -0.0, 1e-20, -1e-12, 5.0, -1e6, 1e30, -1e30], dtype=jnp.float32
    ).reshape(1, 1, 2, 4)
    y_edge = asinh_pallas(x_edge)
    jax.block_until_ready(y_edge)
    ref_edge = jnp.arcsinh(x_edge)
    rel = jnp.abs(y_edge - ref_edge) / jnp.maximum(jnp.abs(ref_edge), 1e-30)
    assert jnp.max(rel) < 2e-5
    assert y_edge.shape == x_edge.shape and y_edge.dtype == x_edge.dtype
    # -0.0 must stay -0.0 (odd symmetry at zero).
    assert jnp.signbit(y_edge.reshape(-1)[1])

    # bf16 path (exercises the approx-reciprocal, 16-sublane packing).
    x_bf16 = (jax.random.normal(key, (2, 4, 16, 16), dtype=jnp.float32) * 3.0
              ).astype(jnp.bfloat16)
    y_bf16 = asinh_pallas(x_bf16)
    jax.block_until_ready(y_bf16)
    ref_bf16 = jnp.arcsinh(x_bf16.astype(jnp.float32))
    rel_bf16 = jnp.abs(y_bf16.astype(jnp.float32) - ref_bf16) / jnp.maximum(
        jnp.abs(ref_bf16), 1e-3)
    assert y_bf16.dtype == jnp.bfloat16 and y_bf16.shape == x_bf16.shape
    assert jnp.max(rel_bf16) < 2e-2

    print("KERNEL_OK")
</pallas_src>

<mosaic_0001>
module attributes {stable_mosaic.version = 11 : i64} {
  func.func @_asinh_kernel(%arg0: i32, %arg1: memref<2x1024xf32, #tpu.memory_space<vmem>>, %arg2: memref<2x1024xf32, #tpu.memory_space<vmem>>) attributes {dimension_semantics = [#tpu.dimension_semantics<parallel>], iteration_bounds = array<i64: 1>, scalar_prefetch = 0 : i64, scratch_operands = 0 : i64, tpu.core_type = #tpu.core_type<tc>, window_params = [{transform_indices = @transform_0, window_bounds = array<i64: 2, 1024>}, {transform_indices = @transform_1, window_bounds = array<i64: 2, 1024>}]} {
    %c0 = arith.constant 0 : index
    %c0_0 = arith.constant 0 : index
    %0 = vector.load %arg1[%c0, %c0_0] : memref<2x1024xf32, #tpu.memory_space<vmem>>, vector<2x1024xf32>
    %1 = math.absf %0 : vector<2x1024xf32>
    %2 = arith.mulf %1, %1 : vector<2x1024xf32>
    %cst = arith.constant 1.000000e+00 : f32
    %3 = vector.broadcast %cst : f32 to vector<2x1024xf32>
    %4 = arith.addf %3, %2 : vector<2x1024xf32>
    %5 = math.sqrt %4 : vector<2x1024xf32>
    %cst_1 = arith.constant 1.000000e+00 : f32
    %6 = vector.broadcast %cst_1 : f32 to vector<2x1024xf32>
    %7 = arith.addf %6, %5 : vector<2x1024xf32>
    %8 = arith.divf %2, %7 : vector<2x1024xf32>
    %9 = arith.addf %1, %8 : vector<2x1024xf32>
    %cst_2 = arith.constant 0x49800000 : f32
    %10 = vector.broadcast %cst_2 : f32 to vector<2x1024xf32>
    %11 = arith.cmpf ogt, %1, %10 : vector<2x1024xf32>
    %12 = arith.select %11, %1, %9 : vector<2x1024xi1>, vector<2x1024xf32>
    %13 = math.log1p %12 : vector<2x1024xf32>
    %cst_3 = arith.constant 0.693147182 : f32
    %cst_4 = arith.constant 0.000000e+00 : f32
    %14 = vector.broadcast %cst_3 : f32 to vector<2x1024xf32>
    %15 = vector.broadcast %cst_4 : f32 to vector<2x1024xf32>
    %16 = arith.select %11, %14, %15 : vector<2x1024xi1>, vector<2x1024xf32>
    %17 = arith.addf %13, %16 : vector<2x1024xf32>
    %18 = tpu.bitcast %17 : vector<2x1024xf32> -> vector<2x1024xi32>
    %19 = tpu.bitcast %0 : vector<2x1024xf32> -> vector<2x1024xi32>
    %c-2147483648_i32 = arith.constant -2147483648 : i32
    %20 = vector.broadcast %c-2147483648_i32 : i32 to vector<2x1024xi32>
    %21 = arith.andi %19, %20 : vector<2x1024xi32>
    %22 = arith.ori %18, %21 : vector<2x1024xi32>
    %23 = tpu.bitcast %22 : vector<2x1024xi32> -> vector<2x1024xf32>
    %c0_5 = arith.constant 0 : index
    %c0_6 = arith.constant 0 : index
    %24 = vector.load %arg2[%c0_5, %c0_6] : memref<2x1024xf32, #tpu.memory_space<vmem>>, vector<2x1024xf32>
    tpu.vector_store %arg2[%c0_5, %c0_6], %23 {strides = array<i32>} : memref<2x1024xf32, #tpu.memory_space<vmem>>, vector<2x1024xf32>,
    return
  }
  func.func @transform_0(%arg0: i32) -> (i32, i32) {
    %c0_i32 = arith.constant 0 : i32
    %c0_i32_0 = arith.constant 0 : i32
    return %arg0, %c0_i32 : i32, i32
  }
  func.func @transform_1(%arg0: i32) -> (i32, i32) {
    %c0_i32 = arith.constant 0 : i32
    %c0_i32_0 = arith.constant 0 : i32
    return %arg0, %c0_i32 : i32, i32
  }
}

</mosaic_0001>

<bundles_post_ra>
// kernel: tpu_custom_call.1
= control target key start
LH: loop header
LB: loop body
LE: loop exit
PB: predicated region body
PF: predicated region fallthrough
CT: control target
= control target key end

     0   :  { %6 = vsyncpa [#allocation3], 0  ;;  %s364_s0 = inlined_call_operand.hbm [shape: f32[2,1024], index: 0, kind: input, shape index: {}]   ;;  %s365_s1 = inlined_call_operand.hbm [shape: f32[2,1024], index: 1, kind: output, shape index: {}]  }
   0x1   :  { %7 = vsyncpa [#allocation4], 0  ;;  %s284_s6 = smov [#allocation2]   ;;  %s236_s10 = scalar_lea.hbm %s364_s0, 256 }
   0x2   :  { %s14_s7 = sshll.u32 %s284_s6, 4  ;;  %p237_p0 = scmp.ne.s32.totalorder %s364_s0, %s236_s10  ;;  %s15_s7 = int_to_ptr.vmem [resolvable:$true] %s14_s7 }
   0x3   :  { %p240_p1 = scmp.lt.u32.totalorder %s236_s10, %s364_s0 }
   0x5   :  { %p242_p2 = pnand %p240_p1, %p237_p0 }
   0x7   :  { %245 = shalt.err (!%p242_p2)
}
   0x8   :  { %s246_s15 = scalar_lea.vmem %s15_s7, 256  ;;  %p251_p4 = scmp.lt.s32.totalorder %s15_s7, %s15_s7 }
   0x9   :  { %p247_p3 = scmp.ne.s32.totalorder %s15_s7, %s246_s15  ;;  %p252_p5 = scmp.lt.s32.totalorder %s246_s15, %s246_s15 }
   0xb   :  { %p253_p6 = por %p252_p5, %p251_p4 }
   0xd   :  { %p254_p7 = pnand %p253_p6, %p247_p3 }
   0xf   :  { %257 = shalt.err (!%p254_p7)
}
  0x10   :  { %17 = dma.hbm_to_vmem [thread:$0]  %s364_s0, 256, %s15_s7, [#allocation3]  }
  0x11   :  { %280 = dma.done.wait [#allocation3], 256  }
  0x12   :  { %281 = vsyncadd [#allocation3], 4294967040  ;;  %v21_v0 = vld [vmem:[#allocation2] sm:$0xff]  ;;  %v310_v1 = vld [vmem:[#allocation2 + $0x8] sm:$0xff]  ;;  %v285_v25 = vmov 1983009808   ;;  %v83_v27 = vlaneseq }
  0x13   :  { %v312_v2 = vand.u32 2147483647, %v21_v0  ;;  %v315_v3 = vand.u32 2147483647, %v310_v1  ;;  %v81_v26 = vunpack.c.l.s4 %v285_v25  ;;  %v115_v40 = vcombine.high %v21_v0, %v21_v0  ;;  %s287_s0 = smov [#allocation5]  }
  0x14   :  { %v84_v34 = vshrl.u32 %v83_v27, 7  ;;  %v132_v43 = vcombine.high %v310_v1, %v310_v1  ;;  %v286_v52 = vmov 0.0   ;;  %s209_s18 = sshll.u32 %s287_s0, 4  ;;  %s210_s18 = int_to_ptr.vmem [resolvable:$true] %s209_s18 }
  0x15   :  { %v25_v4 = vmul.f32 %v312_v2, %v312_v2  ;;  %v26_v5 = vmul.f32 %v315_v3, %v315_v3  ;;  %vm51_vm4 = vcmp.gt.f32.partialorder %v312_v2, 1048576.0  ;;  %vm52_vm5 = vcmp.gt.f32.partialorder %v315_v3, 1048576.0  ;;  %s258_s19 = scalar_lea.vmem %s210_s18, 256  ;;  %p263_p9 = scmp.lt.s32.totalorder %s210_s18, %s210_s18 }
  0x16   :  { %v82_v33 = vunpack.c.0.s8 %v81_v26  ;;  %v73_v53 = vsel %vm51_vm4, 0.6931472, %v286_v52  ;;  %v74_v57 = vsel %vm52_vm5, 0.6931472, %v286_v52  ;;  %p259_p8 = scmp.ne.s32.totalorder %s210_s18, %s258_s19  ;;  %p264_p10 = scmp.lt.s32.totalorder %s258_s19, %s258_s19 }
  0x17   :  { %v27_v6 = vadd.f32 1.0, %v25_v4  ;;  %v28_v7 = vadd.f32 1.0, %v26_v5 }
  0x18   :  { %v331_v37 = vsub.s32 %v82_v33, %v84_v34  ;;  %p265_p11 = por %p264_p10, %p263_p9 }
  0x19   :  { %224 = vrsqrt.f32 %v27_v6  ;;  %vm31_vm0 = vcmp.eq.f32.partialorder %v27_v6, inf  ;;  %v34_v9 = vand.u32 2147483648, %v27_v6  ;;  %vm33_vm1 = vcmp.eq.f32.partialorder %v27_v6, 0.0 }
  0x1a   :  { %226 = vrsqrt.f32 %v28_v7  ;;  %vm38_vm2 = vcmp.eq.f32.partialorder %v28_v7, inf  ;;  %v41_v12 = vand.u32 2147483648, %v28_v7  ;;  %vm40_vm3 = vcmp.eq.f32.partialorder %v28_v7, 0.0  ;;  %p266_p12 = pnand %p265_p11, %p259_p8 }
  0x1b   :  { %v122_v44 = vrot.slane %v21_v0, %v331_v37  ;;  %v139_v46 = vrot.slane %v310_v1, %v331_v37  ;;  %v129_v48 = vrot.slane %v115_v40, %v331_v37  ;;  %v146_v54 = vrot.slane %v132_v43, %v331_v37 }
  0x1d   :  { %v130_v55 = vcombine.high %v122_v44, %v122_v44  ;;  %v147_v59 = vcombine.high %v139_v46, %v139_v46  ;;  %v131_v61 = vcombine.high %v129_v48, %v129_v48  ;;  %v149_v62 = vand.u32 2147483648, %v122_v44 }
  0x1e   :  { %v148_v1 = vcombine.high %v146_v54, %v146_v54 }
  0x23   :  { %v225_v8 = vpop.eup %224 }
  0x24   :  { %v227_v10 = vpop.eup %226  ;;  %v30_v11 = vmul.f32 %v225_v8, %v27_v6 }
  0x25   :  { %v37_v13 = vmul.f32 %v227_v10, %v28_v7  ;;  %v154_v10 = vand.u32 2147483648, %v147_v59 }
  0x26   :  { %v32_v14 = vsel %vm31_vm0, %v27_v6, %v30_v11  ;;  %v150_v6 = vand.u32 2147483648, %v130_v55 }
  0x27   :  { %v35_v15 = vsel %vm33_vm1, %v34_v9, %v32_v14  ;;  %v39_v16 = vsel %vm38_vm2, %v28_v7, %v37_v13  ;;  %v151_v7 = vand.u32 2147483648, %v129_v48  ;;  %v152_v13 = vand.u32 2147483648, %v131_v61 }
  0x28   :  { %v43_v17 = vadd.f32 1.0, %v35_v15  ;;  %v42_v18 = vsel %vm40_vm3, %v41_v12, %v39_v16 }
  0x29   :  { %v44_v19 = vadd.f32 1.0, %v42_v18 }
  0x2a   :  { %228 = vrcp.f32 %v43_v17  ;;  %v156_v17 = vand.u32 2147483648, %v148_v1 }
  0x2b   :  { %230 = vrcp.f32 %v44_v19 }
  0x34   :  { %v229_v20 = vpop.eup %228 }
  0x35   :  { %v231_v21 = vpop.eup %230  ;;  %v46_v22 = vmul.f32 %v229_v20, %v25_v4  ;;  %v153_v4 = vand.u32 2147483648, %v139_v46 }
  0x36   :  { %v48_v23 = vmul.f32 %v231_v21, %v26_v5 }
  0x37   :  { %v49_v24 = vadd.f32 %v46_v22, %v312_v2 }
  0x38   :  { %v50_v28 = vadd.f32 %v48_v23, %v315_v3 }
  0x39   :  { %v53_v29 = vsel %vm51_vm4, %v312_v2, %v49_v24 }
  0x3a   :  { %v55_v30 = vadd.f32 1.0, %v53_v29  ;;  %v54_v31 = vsel %vm52_vm5, %v315_v3, %v50_v28  ;;  %v58_v35 = vmul.f32 -0.5, %v53_v29  ;;  %v61_v39 = vand.u32 2147483647, %v53_v29 }
  0x3b   :  { %v64_v32 = vadd.f32 1.0, %v54_v31  ;;  %v67_v36 = vmul.f32 -0.5, %v54_v31  ;;  %v70_v42 = vand.u32 2147483647, %v54_v31  ;;  %v155_v3 = vand.u32 2147483648, %v146_v54 }
  0x3c   :  { %232 = vlog2.f32 %v55_v30  ;;  %v59_v38 = vadd.f32 1.0, %v58_v35  ;;  %vm62_vm6 = vcmp.lt.f32.partialorder %v61_v39, 0.0004427343 }
  0x3d   :  { %234 = vlog2.f32 %v64_v32  ;;  %v68_v41 = vadd.f32 1.0, %v67_v36  ;;  %vm71_vm7 = vcmp.lt.f32.partialorder %v70_v42, 0.0004427343 }
  0x3e   :  { %v60_v45 = vmul.f32 %v59_v38, %v53_v29 }
  0x3f   :  { %v69_v49 = vmul.f32 %v68_v41, %v54_v31 }
  0x46   :  { %v233_v47 = vpop.eup %232 }
  0x47   :  { %v235_v50 = vpop.eup %234  ;;  %v57_v51 = vmul.f32 0.6931472, %v233_v47 }
  0x48   :  { %v66_v56 = vmul.f32 0.6931472, %v235_v50 }
  0x49   :  { %v63_v58 = vsel %vm62_vm6, %v60_v45, %v57_v51 }
  0x4a   :  { %v75_v60 = vadd.f32 %v73_v53, %v63_v58  ;;  %v72_v63 = vsel %vm71_vm7, %v69_v49, %v66_v56 }
  0x4b   :  { %v76_v0 = vadd.f32 %v74_v57, %v72_v63 }
  0x4c   :  { %v79_v5 = vcombine.high %v75_v60, %v75_v60  ;;  %v86_v2 = vrot.slane %v75_v60, %v331_v37 }
  0x4d   :  { %v96_v8 = vcombine.high %v76_v0, %v76_v0  ;;  %v103_v9 = vrot.slane %v76_v0, %v331_v37 }
  0x4e   :  { %v93_v11 = vrot.slane %v79_v5, %v331_v37  ;;  %v94_v12 = vcombine.high %v86_v2, %v86_v2  ;;  %v157_v14 = vor.u32 %v149_v62, %v86_v2 }
  0x4f   :  { %v110_v15 = vrot.slane %v96_v8, %v331_v37  ;;  %v111_v16 = vcombine.high %v103_v9, %v103_v9  ;;  %v161_v18 = vor.u32 %v153_v4, %v103_v9 }
  0x50   :  { %v95_v19 = vcombine.high %v93_v11, %v93_v11  ;;  %v158_v20 = vor.u32 %v150_v6, %v94_v12  ;;  %v159_v21 = vor.u32 %v151_v7, %v93_v11 }
  0x51   :  { %v112_v22 = vcombine.high %v110_v15, %v110_v15  ;;  %v162_v23 = vor.u32 %v154_v10, %v111_v16  ;;  %v163_v24 = vor.u32 %v155_v3, %v110_v15 }
  0x52   :  { %v160_v25 = vor.u32 %v152_v13, %v95_v19  ;;  %v165_v26 = vcombine.low %v157_v14, %v158_v20 }
  0x53   :  { %v164_v27 = vor.u32 %v156_v17, %v112_v22  ;;  %v182_v28 = vcombine.low %v161_v18, %v162_v23 }
  0x54   :  { %v166_v29 = vcombine.low %v159_v21, %v160_v25  ;;  %v173_v30 = vrot.slane %v165_v26, %v331_v37 }
  0x55   :  { %v183_v31 = vcombine.low %v163_v24, %v164_v27  ;;  %v190_v32 = vrot.slane %v182_v28, %v331_v37 }
  0x56   :  { %v180_v33 = vrot.slane %v166_v29, %v331_v37 }
  0x57   :  { %v197_v34 = vrot.slane %v183_v31, %v331_v37 }
  0x58   :  { %v181_v35 = vcombine.low %v173_v30, %v180_v33 }
  0x59   :  { %v198_v36 = vcombine.low %v190_v32, %v197_v34 }
  0x5a   :  { %201 = vst [vmem:[#allocation5] sm:$0xff] %v181_v35 }
  0x5b   :  { %202 = vst [vmem:[#allocation5 + $0x8] sm:$0xff] %v198_v36 }
  0x5c   :  { %269 = shalt.err (!%p266_p12)
}
  0x5d   :  { %s270_s22 = scalar_lea.hbm %s365_s1, 256 }
  0x5e   :  { %p271_p13 = scmp.ne.s32.totalorder %s365_s1, %s270_s22  ;;  %p274_p0 = scmp.lt.u32.totalorder %s270_s22, %s365_s1 }
  0x60   :  { %p276_p1 = pnand %p274_p0, %p271_p13 }
  0x62   :  { %279 = shalt.err (!%p276_p1)
}
  0x63   :  { %212 = dma.vmem_to_hbm [thread:$0]  %s210_s18, 256, %s365_s1, [#allocation4]  }
  0x64   :  { %282 = dma.done.wait [#allocation4], 256  }
  0x65   :  { %283 = vsyncadd [#allocation4], 4294967040 }
  0x66   :  { %216 = vsyncpa [#allocation3], 1 }
  0x67   :  { %217 = vsyncpa [#allocation4], 1 }

</bundles_post_ra>
